<compile_context>
chip_gen: v7x
topology: tpu7x:2x2x1
jax: 0.10.0
libtpu: 0.0.40
codegen_flags: <defaults>
</compile_context>

<pallas_src>
import functools
import math

import jax
import jax.numpy as jnp
from jax.experimental import pallas as pl
from jax.experimental.pallas import tpu as pltpu


# ----------------------------- Pallas kernel ------------------------------ #
def _spike_chunk_kernel(inp_ref, win_hbm, wrec_hbm, out_ref,
                        win_ref, wrec_ref, v_ref, refr_ref, spk_ref, cur_ref,
                        sem_ref,
                        *, n_out, tc, koeff, rest, reset, threshold,
                        dt, refr_period, low_bound, unroll):
    """One grid step == one chunk of `tc` simulation timesteps.

    inp_ref : (tc*B, n_in)   input spikes for this chunk (time-major rows)
    win_hbm : (n_in, N)      HBM ref: W.T rows of the input neurons
    wrec_hbm: (N, N)         HBM ref: W.T with the first n_in rows zeroed
    out_ref : (tc, B, n_out) output spikes (per-step leading-index store)
    win_ref / wrec_ref : VMEM scratch, weights resident across all chunks
    v_ref / refr_ref   : (B, N) f32 state, carried across chunks
    spk_ref            : (B, N) previous-step spikes (full fired mask)
    cur_ref            : (tc*B, N) hoisted input-driven current for the chunk
    sem_ref            : DMA semaphores for the one-time weight upload
    """
    c = pl.program_id(0)
    B, N = v_ref.shape

    @pl.when(c == 0)
    def _init():
        # One-time weight upload; scratch persists across the sequential grid,
        # so the weights stay resident (single-buffered) for all chunks.
        cp_in = pltpu.make_async_copy(win_hbm, win_ref, sem_ref.at[0])
        cp_rec = pltpu.make_async_copy(wrec_hbm, wrec_ref, sem_ref.at[1])
        cp_in.start()
        cp_rec.start()
        v_ref[...] = jnp.zeros_like(v_ref)
        refr_ref[...] = jnp.zeros_like(refr_ref)
        spk_ref[...] = jnp.zeros_like(spk_ref)
        cp_in.wait()
        cp_rec.wait()

    # Input-driven current for the whole chunk in one MXU matmul
    # (independent of the recurrent state, so hoisted out of the time loop).
    cur_ref[...] = jnp.dot(inp_ref[...], win_ref[...],
                           preferred_element_type=jnp.float32
                           ).astype(cur_ref.dtype)

    def step(t, carry):
        v, refr, spk = carry

        # B is a multiple of 8 (padded in the wrapper) -> tile-aligned read.
        row = pl.multiple_of(t * B, 8)
        # TODO(synk): when N fits the MXU staging registers, keep wrec resident
        # via pltpu.matmul_push_rhs (once per chunk) + matmul_acc_lhs per step
        # to avoid re-pushing the RHS every timestep.
        cur = cur_ref[pl.ds(row, B), :].astype(jnp.float32) + jnp.dot(
            spk, wrec_ref[...], preferred_element_type=jnp.float32)

        # leaky integration
        v = (v - rest) * koeff + rest + cur
        # refractory clamp (uses counters from before this step's decrement)
        v = jnp.where(refr > 0.0, reset, v)
        # threshold
        fired = v >= threshold
        # refractory counter update
        refr = jnp.where(fired, refr_period, refr - dt)
        # optional lower bound on membrane potential (after spike detection)
        if low_bound is not None:
            v = jnp.where(v < low_bound, low_bound, v)

        # Full fired mask drives the recurrence (input rows of wrec are zero,
        # so no per-step lane slice is needed for the recurrent operand).
        spk = fired.astype(spk.dtype)
        # Single aligned store of this step's output spikes.
        # TODO(synk): for non-128-aligned (N - n_out) this static lane slice
        # still costs one small XLU rotation per step; removing it requires
        # reordering / padding the neuron permutation in the wrapper.
        out_ref[t] = fired[:, N - n_out:].astype(out_ref.dtype)
        return v, refr, spk

    v, refr, spk = jax.lax.fori_loop(
        0, tc, step, (v_ref[...], refr_ref[...], spk_ref[...]), unroll=unroll)

    # spill state for the next chunk
    v_ref[...] = v
    refr_ref[...] = refr
    spk_ref[...] = spk


# ------------------------------- wrapper ----------------------------------- #
def spike_nn_forward(inp_bnt, weights, *, n_in, n_out,
                     dt, tau, threshold, reset=0.0, rest=0.0,
                     refr_period=None, low_bound=None,
                     time_block=None, unroll=8,
                     matmul_dtype=jnp.bfloat16, cur_dtype=jnp.float32):
    """Mirrors SpikeNN.forward(input, refractor_period=True, logging=False).

    inp_bnt : [batch, n_in, time]  input spike trains
    weights : [N, N]  row i = incoming weights of neuron i (transposed
                      adjacency, like self.weights_ in the module)
    returns : (output uint8 [batch, n_out, time], None, None, None)
    """
    if refr_period is None:
        refr_period = dt
    # same constant as np.exp(-dt/tau) in the module (used in f32 math)
    koeff = float(math.exp(-dt / tau))

    B, _, T = inp_bnt.shape
    N = weights.shape[0]
    assert 0 < n_in < N and 0 < n_out <= N

    # Pad batch to a sublane multiple so per-step state/current tiles align.
    B_p = max(8, int(pl.cdiv(B, 8)) * 8)

    mm_bytes = jnp.dtype(matmul_dtype).itemsize
    cur_bytes = jnp.dtype(cur_dtype).itemsize

    if time_block is None:
        # Keep the per-chunk current slab modest (v7x has only 64 MiB VMEM),
        # and prefer a chunk length that divides T (no wasted padded steps).
        budget = 24 << 20
        cap = max(1, min(T, 512, budget // max(1, cur_bytes * B_p * N)))
        tc = cap
        for cand in range(cap, 0, -1):
            if T % cand == 0:
                tc = cand
                break
    else:
        tc = int(time_block)
    n_chunks = int(pl.cdiv(T, tc))
    t_pad = n_chunks * tc
    # NOTE: if T % tc != 0 the padded timesteps evolve state on zero input;
    # the returned (trimmed) output is still correct, only the internal
    # end-of-run state corresponds to t_pad rather than T.

    # Time-major input spikes, padded to (t_pad, B_p), reshaped so each chunk
    # is a contiguous (tc*B_p, n_in) slab.
    inp_tbn = jnp.transpose(inp_bnt, (2, 0, 1)).astype(matmul_dtype)
    inp_tbn = jnp.pad(inp_tbn, ((0, t_pad - T), (0, B_p - B), (0, 0)))
    inp_chunks = inp_tbn.reshape(n_chunks, tc * B_p, n_in)

    # Transposed weights: current = spikes @ W.T.
    # win  = rows of the input neurons (drives the hoisted per-chunk matmul).
    # wrec = full W.T with the input-neuron rows zeroed (drives the per-step
    #        recurrent matmul from the full fired mask -> no lane slicing).
    wt = jnp.asarray(weights, jnp.float32).T
    win = wt[:n_in, :].astype(matmul_dtype)               # (n_in, N)
    wrec = wt.at[:n_in, :].set(0.0).astype(matmul_dtype)  # (N, N)

    kernel = functools.partial(
        _spike_chunk_kernel,
        n_out=n_out, tc=tc, koeff=koeff, rest=float(rest),
        reset=float(reset), threshold=float(threshold), dt=float(dt),
        refr_period=float(refr_period), low_bound=low_bound,
        unroll=max(1, min(int(unroll), tc)))

    # VMEM budget (weights single-buffered; input/output blocks double-buffered
    # by the pipeline; state + current scratch).  Raise the scoped limit so
    # v5e/v6e defaults (16/32 MiB) do not reject valid configs.
    vmem_need = (
        (n_in * N + N * N) * mm_bytes
        + 2 * (tc * B_p * n_in) * mm_bytes
        + 2 * (tc * B_p * n_out) * 2
        + 2 * (B_p * N) * 4
        + (B_p * N) * mm_bytes
        + (tc * B_p * N) * cur_bytes
    )
    vmem_limit = int(min(max(vmem_need * 5 // 4 + (4 << 20), 32 << 20),
                         96 << 20))

    out_chunks = pl.pallas_call(
        kernel,
        out_shape=jax.ShapeDtypeStruct((n_chunks, tc, B_p, n_out),
                                       jnp.bfloat16),
        grid_spec=pltpu.PrefetchScalarGridSpec(
            num_scalar_prefetch=0,
            grid=(n_chunks,),
            in_specs=[
                pl.BlockSpec((None, tc * B_p, n_in), lambda c: (c, 0, 0)),
                pl.BlockSpec(memory_space=pl.ANY),   # win  stays in HBM
                pl.BlockSpec(memory_space=pl.ANY),   # wrec stays in HBM
            ],
            out_specs=pl.BlockSpec((None, tc, B_p, n_out),
                                   lambda c: (c, 0, 0, 0)),
            scratch_shapes=[
                pltpu.VMEM((n_in, N), matmul_dtype),      # resident win
                pltpu.VMEM((N, N), matmul_dtype),         # resident wrec
                pltpu.VMEM((B_p, N), jnp.float32),        # membrane potentials
                pltpu.VMEM((B_p, N), jnp.float32),        # refractory counters
                pltpu.VMEM((B_p, N), matmul_dtype),       # previous spikes
                pltpu.VMEM((tc * B_p, N), cur_dtype),     # chunk input current
                pltpu.SemaphoreType.DMA((2,)),            # weight-upload sems
            ],
        ),
        # Time is a recurrence -> sequential grid.
        # TODO(synk): on v7x add a leading "parallel" batch grid axis (with
        # per-shard state scratch) so the second TensorCore is used.
        compiler_params=pltpu.CompilerParams(
            dimension_semantics=("arbitrary",),
            vmem_limit_bytes=vmem_limit),
    )(inp_chunks, win, wrec)

    # (C, tc, B_p, n_out) -> [batch, n_out, time]; the final layout transpose
    # is one small XLA pass over B*n_out*T spikes (time-major in-kernel stores
    # avoid the per-step lane-select that dominated v2).
    out = out_chunks.reshape(t_pad, B_p, n_out)
    out = jnp.transpose(out, (1, 2, 0))[:B, :, :T]
    return out.astype(jnp.uint8), None, None, None


# ------------------------- pure-JAX reference ------------------------------ #
def spike_nn_reference(inp_bnt, weights, *, n_in, n_out,
                       dt, tau, threshold, reset=0.0, rest=0.0,
                       refr_period=None, low_bound=None):
    if refr_period is None:
        refr_period = dt
    koeff = jnp.float32(math.exp(-dt / tau))   # same constant as the kernel
    B, _, T = inp_bnt.shape
    N = weights.shape[0]
    W = jnp.asarray(weights, jnp.float32)
    state = jnp.zeros((B, N), jnp.float32)
    refr = jnp.zeros((B, N), jnp.float32)
    spk = jnp.zeros((B, N), jnp.float32)
    outs = []
    for t in range(T):
        s = spk.at[:, :n_in].set(inp_bnt[:, :, t].astype(jnp.float32))
        current = s @ W.T
        v = (state - rest) * koeff + rest + current
        v = jnp.where(refr > 0.0, reset, v)
        fired = v >= threshold
        refr = jnp.where(fired, refr_period, refr - dt)
        if low_bound is not None:
            v = jnp.where(v < low_bound, low_bound, v)
        state = v
        spk = fired.astype(jnp.float32)
        outs.append(fired[:, N - n_out:])
    return jnp.stack(outs, axis=-1).astype(jnp.uint8)


# --------------------------------- main ------------------------------------ #
if __name__ == "__main__":
    # Synthetic "graph": N total neurons, first n_in are inputs, last n_out are
    # outputs (matching the module's input/hidden/output permutation).
    N, n_in, n_out = 32, 8, 8
    B, T = 2, 16
    dt, tau, threshold = 1.0, 5.0, 0.5

    key = jax.random.PRNGKey(0)
    kw, ki = jax.random.split(key)
    # Deterministic synthetic weights quantized to multiples of 1/16 (exactly
    # representable in bf16, sums exact in f32) so the bf16 kernel matmul and
    # the f32 reference agree bit-for-bit.
    weights = jnp.round(4.8 * jax.random.normal(kw, (N, N), dtype=jnp.float32)) / 16.0
    # binary input spike trains [batch, input_neurons, time]
    x = jax.random.bernoulli(ki, p=0.5, shape=(B, n_in, T)).astype(jnp.float32)

    out, _, _, _ = spike_nn_forward(
        x, weights, n_in=n_in, n_out=n_out,
        dt=dt, tau=tau, threshold=threshold, reset=0.0, rest=0.0,
        refr_period=None, low_bound=None,
        time_block=8)            # 2 chunks -> exercises cross-chunk state carry
    out = jax.block_until_ready(out)

    ref = spike_nn_reference(
        x, weights, n_in=n_in, n_out=n_out,
        dt=dt, tau=tau, threshold=threshold, reset=0.0, rest=0.0,
        refr_period=None, low_bound=None)

    assert out.shape == (B, n_out, T) and out.dtype == jnp.uint8
    assert bool(jnp.all(out == ref)), "Pallas kernel mismatch vs reference"

    # TODO(synk): logging=True path (inputs_log/neurons_log/outputs_log),
    # refractor_period=False branch and graded_input_potentials are not
    # implemented; only the default forward path is.
    print("KERNEL_OK")
</pallas_src>

<mosaic_0001>
module attributes {stable_mosaic.version = 11 : i64} {
  func.func @_spike_chunk_kernel(%arg0: i32, %arg1: memref<1x64x8xbf16, #tpu.memory_space<vmem>>, %arg2: memref<8x32xbf16, #tpu.memory_space<any>>, %arg3: memref<32x32xbf16, #tpu.memory_space<any>>, %arg4: memref<1x8x8x8xbf16, #tpu.memory_space<vmem>>, %arg5: memref<8x32xbf16, #tpu.memory_space<vmem>>, %arg6: memref<32x32xbf16, #tpu.memory_space<vmem>>, %arg7: memref<8x32xf32, #tpu.memory_space<vmem>>, %arg8: memref<8x32xf32, #tpu.memory_space<vmem>>, %arg9: memref<8x32xbf16, #tpu.memory_space<vmem>>, %arg10: memref<64x32xf32, #tpu.memory_space<vmem>>, %arg11: memref<2x!tpu.dma_semaphore, #tpu.memory_space<semaphore_mem>>) attributes {dimension_semantics = [#tpu.dimension_semantics<arbitrary>], iteration_bounds = array<i64: 2>, scalar_prefetch = 0 : i64, scratch_operands = 7 : i64, tpu.core_type = #tpu.core_type<tc>, window_params = [{transform_indices = @transform_0, window_bounds = array<i64: 1, 64, 8>}, {}, {}, {transform_indices = @transform_3, window_bounds = array<i64: 1, 8, 8, 8>}]} {
    %c0_i32 = arith.constant 0 : i32
    %0 = arith.cmpi eq, %arg0, %c0_i32 : i32
    %1 = arith.extui %0 : i1 to i32
    %c0_i32_0 = arith.constant 0 : i32
    %2 = arith.cmpi ne, %1, %c0_i32_0 : i32
    scf.if %2 {
      %c0_i32_148 = arith.constant 0 : i32
      %294 = tpu.memref_slice %arg11[%c0_i32_148] : memref<2x!tpu.dma_semaphore, #tpu.memory_space<semaphore_mem>> -> memref<1x!tpu.dma_semaphore, #tpu.memory_space<semaphore_mem>>
      %295 = tpu.memref_squeeze %294 : memref<1x!tpu.dma_semaphore, #tpu.memory_space<semaphore_mem>> -> memref<!tpu.dma_semaphore, #tpu.memory_space<semaphore_mem>>
      tpu.enqueue_dma source(%arg2 : memref<8x32xbf16, #tpu.memory_space<any>>) target(%arg5 : memref<8x32xbf16, #tpu.memory_space<vmem>>) target_semaphore(%295 : memref<!tpu.dma_semaphore, #tpu.memory_space<semaphore_mem>>)
      %c1_i32_149 = arith.constant 1 : i32
      %296 = tpu.memref_slice %arg11[%c1_i32_149] : memref<2x!tpu.dma_semaphore, #tpu.memory_space<semaphore_mem>> -> memref<1x!tpu.dma_semaphore, #tpu.memory_space<semaphore_mem>>
      %297 = tpu.memref_squeeze %296 : memref<1x!tpu.dma_semaphore, #tpu.memory_space<semaphore_mem>> -> memref<!tpu.dma_semaphore, #tpu.memory_space<semaphore_mem>>
      tpu.enqueue_dma source(%arg3 : memref<32x32xbf16, #tpu.memory_space<any>>) target(%arg6 : memref<32x32xbf16, #tpu.memory_space<vmem>>) target_semaphore(%297 : memref<!tpu.dma_semaphore, #tpu.memory_space<semaphore_mem>>)
      %cst_150 = arith.constant 0.000000e+00 : f32
      %298 = vector.broadcast %cst_150 : f32 to vector<8x32xf32>
      %c0_151 = arith.constant 0 : index
      %c0_152 = arith.constant 0 : index
      %299 = vector.load %arg7[%c0_151, %c0_152] : memref<8x32xf32, #tpu.memory_space<vmem>>, vector<8x32xf32>
      tpu.vector_store %arg7[%c0_151, %c0_152], %298 {strides = array<i32>} : memref<8x32xf32, #tpu.memory_space<vmem>>, vector<8x32xf32>,
      %cst_153 = arith.constant 0.000000e+00 : f32
      %300 = vector.broadcast %cst_153 : f32 to vector<8x32xf32>
      %c0_154 = arith.constant 0 : index
      %c0_155 = arith.constant 0 : index
      %301 = vector.load %arg8[%c0_154, %c0_155] : memref<8x32xf32, #tpu.memory_space<vmem>>, vector<8x32xf32>
      tpu.vector_store %arg8[%c0_154, %c0_155], %300 {strides = array<i32>} : memref<8x32xf32, #tpu.memory_space<vmem>>, vector<8x32xf32>,
      %cst_156 = arith.constant 0.000000e+00 : bf16
      %302 = vector.broadcast %cst_156 : bf16 to vector<8x32xbf16>
      %c0_157 = arith.constant 0 : index
      %c0_158 = arith.constant 0 : index
      %303 = vector.load %arg9[%c0_157, %c0_158] : memref<8x32xbf16, #tpu.memory_space<vmem>>, vector<8x32xbf16>
      tpu.vector_store %arg9[%c0_157, %c0_158], %302 {strides = array<i32>} : memref<8x32xbf16, #tpu.memory_space<vmem>>, vector<8x32xbf16>,
      %c0_i32_159 = arith.constant 0 : i32
      %304 = tpu.memref_slice %arg11[%c0_i32_159] : memref<2x!tpu.dma_semaphore, #tpu.memory_space<semaphore_mem>> -> memref<1x!tpu.dma_semaphore, #tpu.memory_space<semaphore_mem>>
      %305 = tpu.memref_squeeze %304 : memref<1x!tpu.dma_semaphore, #tpu.memory_space<semaphore_mem>> -> memref<!tpu.dma_semaphore, #tpu.memory_space<semaphore_mem>>
      tpu.wait_dma2 semaphore(%305 : memref<!tpu.dma_semaphore, #tpu.memory_space<semaphore_mem>>) src(%arg2 : memref<8x32xbf16, #tpu.memory_space<any>>) dst(%arg5 : memref<8x32xbf16, #tpu.memory_space<vmem>>)
      %c1_i32_160 = arith.constant 1 : i32
      %306 = tpu.memref_slice %arg11[%c1_i32_160] : memref<2x!tpu.dma_semaphore, #tpu.memory_space<semaphore_mem>> -> memref<1x!tpu.dma_semaphore, #tpu.memory_space<semaphore_mem>>
      %307 = tpu.memref_squeeze %306 : memref<1x!tpu.dma_semaphore, #tpu.memory_space<semaphore_mem>> -> memref<!tpu.dma_semaphore, #tpu.memory_space<semaphore_mem>>
      tpu.wait_dma2 semaphore(%307 : memref<!tpu.dma_semaphore, #tpu.memory_space<semaphore_mem>>) src(%arg3 : memref<32x32xbf16, #tpu.memory_space<any>>) dst(%arg6 : memref<32x32xbf16, #tpu.memory_space<vmem>>)
    } else {
    }
    %c0 = arith.constant 0 : index
    %c0_1 = arith.constant 0 : index
    %c0_2 = arith.constant 0 : index
    %3 = vector.load %arg1[%c0, %c0_1, %c0_2] : memref<1x64x8xbf16, #tpu.memory_space<vmem>>, vector<1x64x8xbf16>
    %4 = vector.shape_cast %3 : vector<1x64x8xbf16> to vector<64x8xbf16>
    %c0_3 = arith.constant 0 : index
    %c0_4 = arith.constant 0 : index
    %5 = vector.load %arg5[%c0_3, %c0_4] : memref<8x32xbf16, #tpu.memory_space<vmem>>, vector<8x32xbf16>
    %cst = arith.constant dense<0.000000e+00> : vector<64x32xf32>
    %6 = tpu.matmul %4, %5, %cst {dimension_numbers = #tpu.dot_dimension_numbers<[1], [0], [0], [1], [0, 0, 1, 1], [], []>} : vector<64x8xbf16>, vector<8x32xbf16>, vector<64x32xf32> -> vector<64x32xf32>
    %c0_5 = arith.constant 0 : index
    %c0_6 = arith.constant 0 : index
    %7 = vector.load %arg10[%c0_5, %c0_6] : memref<64x32xf32, #tpu.memory_space<vmem>>, vector<64x32xf32>
    tpu.vector_store %arg10[%c0_5, %c0_6], %6 {strides = array<i32>} : memref<64x32xf32, #tpu.memory_space<vmem>>, vector<64x32xf32>,
    %c0_7 = arith.constant 0 : index
    %c0_8 = arith.constant 0 : index
    %8 = vector.load %arg7[%c0_7, %c0_8] : memref<8x32xf32, #tpu.memory_space<vmem>>, vector<8x32xf32>
    %c0_9 = arith.constant 0 : index
    %c0_10 = arith.constant 0 : index
    %9 = vector.load %arg8[%c0_9, %c0_10] : memref<8x32xf32, #tpu.memory_space<vmem>>, vector<8x32xf32>
    %c0_11 = arith.constant 0 : index
    %c0_12 = arith.constant 0 : index
    %10 = vector.load %arg9[%c0_11, %c0_12] : memref<8x32xbf16, #tpu.memory_space<vmem>>, vector<8x32xbf16>
    %c0_i32_13 = arith.constant 0 : i32
    %c8_i32 = arith.constant 8 : i32
    %11 = arith.muli %c0_i32_13, %c8_i32 : i32
    %12 = tpu.assume_multiple %11, 8 : i32
    %13 = arith.index_cast %12 : i32 to index
    %c0_14 = arith.constant 0 : index
    %14 = vector.load %arg10[%13, %c0_14] : memref<64x32xf32, #tpu.memory_space<vmem>>, vector<8x32xf32>
    %c0_15 = arith.constant 0 : index
    %c0_16 = arith.constant 0 : index
    %15 = vector.load %arg6[%c0_15, %c0_16] : memref<32x32xbf16, #tpu.memory_space<vmem>>, vector<32x32xbf16>
    %cst_17 = arith.constant dense<0.000000e+00> : vector<8x32xf32>
    %16 = tpu.matmul %10, %15, %cst_17 {dimension_numbers = #tpu.dot_dimension_numbers<[1], [0], [0], [1], [0, 0, 1, 1], [], []>} : vector<8x32xbf16>, vector<32x32xbf16>, vector<8x32xf32> -> vector<8x32xf32>
    %17 = arith.addf %14, %16 : vector<8x32xf32>
    %cst_18 = arith.constant 0.000000e+00 : f32
    %18 = vector.broadcast %cst_18 : f32 to vector<8x32xf32>
    %19 = arith.subf %8, %18 : vector<8x32xf32>
    %cst_19 = arith.constant 0.818730771 : f32
    %20 = vector.broadcast %cst_19 : f32 to vector<8x32xf32>
    %21 = arith.mulf %19, %20 : vector<8x32xf32>
    %cst_20 = arith.constant 0.000000e+00 : f32
    %22 = vector.broadcast %cst_20 : f32 to vector<8x32xf32>
    %23 = arith.addf %21, %22 : vector<8x32xf32>
    %24 = arith.addf %23, %17 : vector<8x32xf32>
    %cst_21 = arith.constant 0.000000e+00 : f32
    %25 = vector.broadcast %cst_21 : f32 to vector<8x32xf32>
    %26 = arith.cmpf ogt, %9, %25 : vector<8x32xf32>
    %cst_22 = arith.constant 0.000000e+00 : f32
    %27 = vector.broadcast %cst_22 : f32 to vector<8x32xf32>
    %28 = arith.select %26, %27, %24 : vector<8x32xi1>, vector<8x32xf32>
    %cst_23 = arith.constant 5.000000e-01 : f32
    %29 = vector.broadcast %cst_23 : f32 to vector<8x32xf32>
    %30 = arith.cmpf oge, %28, %29 : vector<8x32xf32>
    %cst_24 = arith.constant 1.000000e+00 : f32
    %31 = vector.broadcast %cst_24 : f32 to vector<8x32xf32>
    %32 = arith.subf %9, %31 : vector<8x32xf32>
    %cst_25 = arith.constant 1.000000e+00 : f32
    %33 = vector.broadcast %cst_25 : f32 to vector<8x32xf32>
    %34 = arith.select %30, %33, %32 : vector<8x32xi1>, vector<8x32xf32>
    %35 = arith.extui %30 : vector<8x32xi1> to vector<8x32xi32>
    %36 = arith.sitofp %35 : vector<8x32xi32> to vector<8x32xf32>
    %37 = arith.truncf %36 : vector<8x32xf32> to vector<8x32xbf16>
    %38 = vector.extract_strided_slice %30 {offsets = [0, 24], sizes = [8, 8], strides = [1, 1]} : vector<8x32xi1> to vector<8x8xi1>
    %39 = arith.extui %38 : vector<8x8xi1> to vector<8x8xi32>
    %40 = arith.sitofp %39 : vector<8x8xi32> to vector<8x8xf32>
    %41 = arith.truncf %40 : vector<8x8xf32> to vector<8x8xbf16>
    %c0_26 = arith.constant 0 : index
    %42 = arith.index_cast %c0_i32_13 : i32 to index
    %c0_27 = arith.constant 0 : index
    %c0_28 = arith.constant 0 : index
    %43 = vector.load %arg4[%c0_26, %42, %c0_27, %c0_28] : memref<1x8x8x8xbf16, #tpu.memory_space<vmem>>, vector<1x1x8x8xbf16>
    %44 = vector.shape_cast %43 : vector<1x1x8x8xbf16> to vector<8x8xbf16>
    %45 = vector.shape_cast %41 : vector<8x8xbf16> to vector<1x1x8x8xbf16>
    tpu.vector_store %arg4[%c0_26, %42, %c0_27, %c0_28], %45 {strides = array<i32>} : memref<1x8x8x8xbf16, #tpu.memory_space<vmem>>, vector<1x1x8x8xbf16>,
    %c1_i32 = arith.constant 1 : i32
    %c8_i32_29 = arith.constant 8 : i32
    %46 = arith.muli %c1_i32, %c8_i32_29 : i32
    %47 = tpu.assume_multiple %46, 8 : i32
    %48 = arith.index_cast %47 : i32 to index
    %c0_30 = arith.constant 0 : index
    %49 = vector.load %arg10[%48, %c0_30] : memref<64x32xf32, #tpu.memory_space<vmem>>, vector<8x32xf32>
    %c0_31 = arith.constant 0 : index
    %c0_32 = arith.constant 0 : index
    %50 = vector.load %arg6[%c0_31, %c0_32] : memref<32x32xbf16, #tpu.memory_space<vmem>>, vector<32x32xbf16>
    %cst_33 = arith.constant dense<0.000000e+00> : vector<8x32xf32>
    %51 = tpu.matmul %37, %50, %cst_33 {dimension_numbers = #tpu.dot_dimension_numbers<[1], [0], [0], [1], [0, 0, 1, 1], [], []>} : vector<8x32xbf16>, vector<32x32xbf16>, vector<8x32xf32> -> vector<8x32xf32>
    %52 = arith.addf %49, %51 : vector<8x32xf32>
    %cst_34 = arith.constant 0.000000e+00 : f32
    %53 = vector.broadcast %cst_34 : f32 to vector<8x32xf32>
    %54 = arith.subf %28, %53 : vector<8x32xf32>
    %cst_35 = arith.constant 0.818730771 : f32
    %55 = vector.broadcast %cst_35 : f32 to vector<8x32xf32>
    %56 = arith.mulf %54, %55 : vector<8x32xf32>
    %cst_36 = arith.constant 0.000000e+00 : f32
    %57 = vector.broadcast %cst_36 : f32 to vector<8x32xf32>
    %58 = arith.addf %56, %57 : vector<8x32xf32>
    %59 = arith.addf %58, %52 : vector<8x32xf32>
    %cst_37 = arith.constant 0.000000e+00 : f32
    %60 = vector.broadcast %cst_37 : f32 to vector<8x32xf32>
    %61 = arith.cmpf ogt, %34, %60 : vector<8x32xf32>
    %cst_38 = arith.constant 0.000000e+00 : f32
    %62 = vector.broadcast %cst_38 : f32 to vector<8x32xf32>
    %63 = arith.select %61, %62, %59 : vector<8x32xi1>, vector<8x32xf32>
    %cst_39 = arith.constant 5.000000e-01 : f32
    %64 = vector.broadcast %cst_39 : f32 to vector<8x32xf32>
    %65 = arith.cmpf oge, %63, %64 : vector<8x32xf32>
    %cst_40 = arith.constant 1.000000e+00 : f32
    %66 = vector.broadcast %cst_40 : f32 to vector<8x32xf32>
    %67 = arith.subf %34, %66 : vector<8x32xf32>
    %cst_41 = arith.constant 1.000000e+00 : f32
    %68 = vector.broadcast %cst_41 : f32 to vector<8x32xf32>
    %69 = arith.select %65, %68, %67 : vector<8x32xi1>, vector<8x32xf32>
    %70 = arith.extui %65 : vector<8x32xi1> to vector<8x32xi32>
    %71 = arith.sitofp %70 : vector<8x32xi32> to vector<8x32xf32>
    %72 = arith.truncf %71 : vector<8x32xf32> to vector<8x32xbf16>
    %73 = vector.extract_strided_slice %65 {offsets = [0, 24], sizes = [8, 8], strides = [1, 1]} : vector<8x32xi1> to vector<8x8xi1>
    %74 = arith.extui %73 : vector<8x8xi1> to vector<8x8xi32>
    %75 = arith.sitofp %74 : vector<8x8xi32> to vector<8x8xf32>
    %76 = arith.truncf %75 : vector<8x8xf32> to vector<8x8xbf16>
    %c0_42 = arith.constant 0 : index
    %77 = arith.index_cast %c1_i32 : i32 to index
    %c0_43 = arith.constant 0 : index
    %c0_44 = arith.constant 0 : index
    %78 = vector.load %arg4[%c0_42, %77, %c0_43, %c0_44] : memref<1x8x8x8xbf16, #tpu.memory_space<vmem>>, vector<1x1x8x8xbf16>
    %79 = vector.shape_cast %78 : vector<1x1x8x8xbf16> to vector<8x8xbf16>
    %80 = vector.shape_cast %76 : vector<8x8xbf16> to vector<1x1x8x8xbf16>
    tpu.vector_store %arg4[%c0_42, %77, %c0_43, %c0_44], %80 {strides = array<i32>} : memref<1x8x8x8xbf16, #tpu.memory_space<vmem>>, vector<1x1x8x8xbf16>,
    %c2_i32 = arith.constant 2 : i32
    %c8_i32_45 = arith.constant 8 : i32
    %81 = arith.muli %c2_i32, %c8_i32_45 : i32
    %82 = tpu.assume_multiple %81, 8 : i32
    %83 = arith.index_cast %82 : i32 to index
    %c0_46 = arith.constant 0 : index
    %84 = vector.load %arg10[%83, %c0_46] : memref<64x32xf32, #tpu.memory_space<vmem>>, vector<8x32xf32>
    %c0_47 = arith.constant 0 : index
    %c0_48 = arith.constant 0 : index
    %85 = vector.load %arg6[%c0_47, %c0_48] : memref<32x32xbf16, #tpu.memory_space<vmem>>, vector<32x32xbf16>
    %cst_49 = arith.constant dense<0.000000e+00> : vector<8x32xf32>
    %86 = tpu.matmul %72, %85, %cst_49 {dimension_numbers = #tpu.dot_dimension_numbers<[1], [0], [0], [1], [0, 0, 1, 1], [], []>} : vector<8x32xbf16>, vector<32x32xbf16>, vector<8x32xf32> -> vector<8x32xf32>
    %87 = arith.addf %84, %86 : vector<8x32xf32>
    %cst_50 = arith.constant 0.000000e+00 : f32
    %88 = vector.broadcast %cst_50 : f32 to vector<8x32xf32>
    %89 = arith.subf %63, %88 : vector<8x32xf32>
    %cst_51 = arith.constant 0.818730771 : f32
    %90 = vector.broadcast %cst_51 : f32 to vector<8x32xf32>
    %91 = arith.mulf %89, %90 : vector<8x32xf32>
    %cst_52 = arith.constant 0.000000e+00 : f32
    %92 = vector.broadcast %cst_52 : f32 to vector<8x32xf32>
    %93 = arith.addf %91, %92 : vector<8x32xf32>
    %94 = arith.addf %93, %87 : vector<8x32xf32>
    %cst_53 = arith.constant 0.000000e+00 : f32
    %95 = vector.broadcast %cst_53 : f32 to vector<8x32xf32>
    %96 = arith.cmpf ogt, %69, %95 : vector<8x32xf32>
    %cst_54 = arith.constant 0.000000e+00 : f32
    %97 = vector.broadcast %cst_54 : f32 to vector<8x32xf32>
    %98 = arith.select %96, %97, %94 : vector<8x32xi1>, vector<8x32xf32>
    %cst_55 = arith.constant 5.000000e-01 : f32
    %99 = vector.broadcast %cst_55 : f32 to vector<8x32xf32>
    %100 = arith.cmpf oge, %98, %99 : vector<8x32xf32>
    %cst_56 = arith.constant 1.000000e+00 : f32
    %101 = vector.broadcast %cst_56 : f32 to vector<8x32xf32>
    %102 = arith.subf %69, %101 : vector<8x32xf32>
    %cst_57 = arith.constant 1.000000e+00 : f32
    %103 = vector.broadcast %cst_57 : f32 to vector<8x32xf32>
    %104 = arith.select %100, %103, %102 : vector<8x32xi1>, vector<8x32xf32>
    %105 = arith.extui %100 : vector<8x32xi1> to vector<8x32xi32>
    %106 = arith.sitofp %105 : vector<8x32xi32> to vector<8x32xf32>
    %107 = arith.truncf %106 : vector<8x32xf32> to vector<8x32xbf16>
    %108 = vector.extract_strided_slice %100 {offsets = [0, 24], sizes = [8, 8], strides = [1, 1]} : vector<8x32xi1> to vector<8x8xi1>
    %109 = arith.extui %108 : vector<8x8xi1> to vector<8x8xi32>
    %110 = arith.sitofp %109 : vector<8x8xi32> to vector<8x8xf32>
    %111 = arith.truncf %110 : vector<8x8xf32> to vector<8x8xbf16>
    %c0_58 = arith.constant 0 : index
    %112 = arith.index_cast %c2_i32 : i32 to index
    %c0_59 = arith.constant 0 : index
    %c0_60 = arith.constant 0 : index
    %113 = vector.load %arg4[%c0_58, %112, %c0_59, %c0_60] : memref<1x8x8x8xbf16, #tpu.memory_space<vmem>>, vector<1x1x8x8xbf16>
    %114 = vector.shape_cast %113 : vector<1x1x8x8xbf16> to vector<8x8xbf16>
    %115 = vector.shape_cast %111 : vector<8x8xbf16> to vector<1x1x8x8xbf16>
    tpu.vector_store %arg4[%c0_58, %112, %c0_59, %c0_60], %115 {strides = array<i32>} : memref<1x8x8x8xbf16, #tpu.memory_space<vmem>>, vector<1x1x8x8xbf16>,
    %c3_i32 = arith.constant 3 : i32
    %c8_i32_61 = arith.constant 8 : i32
    %116 = arith.muli %c3_i32, %c8_i32_61 : i32
    %117 = tpu.assume_multiple %116, 8 : i32
    %118 = arith.index_cast %117 : i32 to index
    %c0_62 = arith.constant 0 : index
    %119 = vector.load %arg10[%118, %c0_62] : memref<64x32xf32, #tpu.memory_space<vmem>>, vector<8x32xf32>
    %c0_63 = arith.constant 0 : index
    %c0_64 = arith.constant 0 : index
    %120 = vector.load %arg6[%c0_63, %c0_64] : memref<32x32xbf16, #tpu.memory_space<vmem>>, vector<32x32xbf16>
    %cst_65 = arith.constant dense<0.000000e+00> : vector<8x32xf32>
    %121 = tpu.matmul %107, %120, %cst_65 {dimension_numbers = #tpu.dot_dimension_numbers<[1], [0], [0], [1], [0, 0, 1, 1], [], []>} : vector<8x32xbf16>, vector<32x32xbf16>, vector<8x32xf32> -> vector<8x32xf32>
    %122 = arith.addf %119, %121 : vector<8x32xf32>
    %cst_66 = arith.constant 0.000000e+00 : f32
    %123 = vector.broadcast %cst_66 : f32 to vector<8x32xf32>
    %124 = arith.subf %98, %123 : vector<8x32xf32>
    %cst_67 = arith.constant 0.818730771 : f32
    %125 = vector.broadcast %cst_67 : f32 to vector<8x32xf32>
    %126 = arith.mulf %124, %125 : vector<8x32xf32>
    %cst_68 = arith.constant 0.000000e+00 : f32
    %127 = vector.broadcast %cst_68 : f32 to vector<8x32xf32>
    %128 = arith.addf %126, %127 : vector<8x32xf32>
    %129 = arith.addf %128, %122 : vector<8x32xf32>
    %cst_69 = arith.constant 0.000000e+00 : f32
    %130 = vector.broadcast %cst_69 : f32 to vector<8x32xf32>
    %131 = arith.cmpf ogt, %104, %130 : vector<8x32xf32>
    %cst_70 = arith.constant 0.000000e+00 : f32
    %132 = vector.broadcast %cst_70 : f32 to vector<8x32xf32>
    %133 = arith.select %131, %132, %129 : vector<8x32xi1>, vector<8x32xf32>
    %cst_71 = arith.constant 5.000000e-01 : f32
    %134 = vector.broadcast %cst_71 : f32 to vector<8x32xf32>
    %135 = arith.cmpf oge, %133, %134 : vector<8x32xf32>
    %cst_72 = arith.constant 1.000000e+00 : f32
    %136 = vector.broadcast %cst_72 : f32 to vector<8x32xf32>
    %137 = arith.subf %104, %136 : vector<8x32xf32>
    %cst_73 = arith.constant 1.000000e+00 : f32
    %138 = vector.broadcast %cst_73 : f32 to vector<8x32xf32>
    %139 = arith.select %135, %138, %137 : vector<8x32xi1>, vector<8x32xf32>
    %140 = arith.extui %135 : vector<8x32xi1> to vector<8x32xi32>
    %141 = arith.sitofp %140 : vector<8x32xi32> to vector<8x32xf32>
    %142 = arith.truncf %141 : vector<8x32xf32> to vector<8x32xbf16>
    %143 = vector.extract_strided_slice %135 {offsets = [0, 24], sizes = [8, 8], strides = [1, 1]} : vector<8x32xi1> to vector<8x8xi1>
    %144 = arith.extui %143 : vector<8x8xi1> to vector<8x8xi32>
    %145 = arith.sitofp %144 : vector<8x8xi32> to vector<8x8xf32>
    %146 = arith.truncf %145 : vector<8x8xf32> to vector<8x8xbf16>
    %c0_74 = arith.constant 0 : index
    %147 = arith.index_cast %c3_i32 : i32 to index
    %c0_75 = arith.constant 0 : index
    %c0_76 = arith.constant 0 : index
    %148 = vector.load %arg4[%c0_74, %147, %c0_75, %c0_76] : memref<1x8x8x8xbf16, #tpu.memory_space<vmem>>, vector<1x1x8x8xbf16>
    %149 = vector.shape_cast %148 : vector<1x1x8x8xbf16> to vector<8x8xbf16>
    %150 = vector.shape_cast %146 : vector<8x8xbf16> to vector<1x1x8x8xbf16>
    tpu.vector_store %arg4[%c0_74, %147, %c0_75, %c0_76], %150 {strides = array<i32>} : memref<1x8x8x8xbf16, #tpu.memory_space<vmem>>, vector<1x1x8x8xbf16>,
    %c4_i32 = arith.constant 4 : i32
    %c8_i32_77 = arith.constant 8 : i32
    %151 = arith.muli %c4_i32, %c8_i32_77 : i32
    %152 = tpu.assume_multiple %151, 8 : i32
    %153 = arith.index_cast %152 : i32 to index
    %c0_78 = arith.constant 0 : index
    %154 = vector.load %arg10[%153, %c0_78] : memref<64x32xf32, #tpu.memory_space<vmem>>, vector<8x32xf32>
    %c0_79 = arith.constant 0 : index
    %c0_80 = arith.constant 0 : index
    %155 = vector.load %arg6[%c0_79, %c0_80] : memref<32x32xbf16, #tpu.memory_space<vmem>>, vector<32x32xbf16>
    %cst_81 = arith.constant dense<0.000000e+00> : vector<8x32xf32>
    %156 = tpu.matmul %142, %155, %cst_81 {dimension_numbers = #tpu.dot_dimension_numbers<[1], [0], [0], [1], [0, 0, 1, 1], [], []>} : vector<8x32xbf16>, vector<32x32xbf16>, vector<8x32xf32> -> vector<8x32xf32>
    %157 = arith.addf %154, %156 : vector<8x32xf32>
    %cst_82 = arith.constant 0.000000e+00 : f32
    %158 = vector.broadcast %cst_82 : f32 to vector<8x32xf32>
    %159 = arith.subf %133, %158 : vector<8x32xf32>
    %cst_83 = arith.constant 0.818730771 : f32
    %160 = vector.broadcast %cst_83 : f32 to vector<8x32xf32>
    %161 = arith.mulf %159, %160 : vector<8x32xf32>
    %cst_84 = arith.constant 0.000000e+00 : f32
    %162 = vector.broadcast %cst_84 : f32 to vector<8x32xf32>
    %163 = arith.addf %161, %162 : vector<8x32xf32>
    %164 = arith.addf %163, %157 : vector<8x32xf32>
    %cst_85 = arith.constant 0.000000e+00 : f32
    %165 = vector.broadcast %cst_85 : f32 to vector<8x32xf32>
    %166 = arith.cmpf ogt, %139, %165 : vector<8x32xf32>
    %cst_86 = arith.constant 0.000000e+00 : f32
    %167 = vector.broadcast %cst_86 : f32 to vector<8x32xf32>
    %168 = arith.select %166, %167, %164 : vector<8x32xi1>, vector<8x32xf32>
    %cst_87 = arith.constant 5.000000e-01 : f32
    %169 = vector.broadcast %cst_87 : f32 to vector<8x32xf32>
    %170 = arith.cmpf oge, %168, %169 : vector<8x32xf32>
    %cst_88 = arith.constant 1.000000e+00 : f32
    %171 = vector.broadcast %cst_88 : f32 to vector<8x32xf32>
    %172 = arith.subf %139, %171 : vector<8x32xf32>
    %cst_89 = arith.constant 1.000000e+00 : f32
    %173 = vector.broadcast %cst_89 : f32 to vector<8x32xf32>
    %174 = arith.select %170, %173, %172 : vector<8x32xi1>, vector<8x32xf32>
    %175 = arith.extui %170 : vector<8x32xi1> to vector<8x32xi32>
    %176 = arith.sitofp %175 : vector<8x32xi32> to vector<8x32xf32>
    %177 = arith.truncf %176 : vector<8x32xf32> to vector<8x32xbf16>
    %178 = vector.extract_strided_slice %170 {offsets = [0, 24], sizes = [8, 8], strides = [1, 1]} : vector<8x32xi1> to vector<8x8xi1>
    %179 = arith.extui %178 : vector<8x8xi1> to vector<8x8xi32>
    %180 = arith.sitofp %179 : vector<8x8xi32> to vector<8x8xf32>
    %181 = arith.truncf %180 : vector<8x8xf32> to vector<8x8xbf16>
    %c0_90 = arith.constant 0 : index
    %182 = arith.index_cast %c4_i32 : i32 to index
    %c0_91 = arith.constant 0 : index
    %c0_92 = arith.constant 0 : index
    %183 = vector.load %arg4[%c0_90, %182, %c0_91, %c0_92] : memref<1x8x8x8xbf16, #tpu.memory_space<vmem>>, vector<1x1x8x8xbf16>
    %184 = vector.shape_cast %183 : vector<1x1x8x8xbf16> to vector<8x8xbf16>
    %185 = vector.shape_cast %181 : vector<8x8xbf16> to vector<1x1x8x8xbf16>
    tpu.vector_store %arg4[%c0_90, %182, %c0_91, %c0_92], %185 {strides = array<i32>} : memref<1x8x8x8xbf16, #tpu.memory_space<vmem>>, vector<1x1x8x8xbf16>,
    %c5_i32 = arith.constant 5 : i32
    %c8_i32_93 = arith.constant 8 : i32
    %186 = arith.muli %c5_i32, %c8_i32_93 : i32
    %187 = tpu.assume_multiple %186, 8 : i32
    %188 = arith.index_cast %187 : i32 to index
    %c0_94 = arith.constant 0 : index
    %189 = vector.load %arg10[%188, %c0_94] : memref<64x32xf32, #tpu.memory_space<vmem>>, vector<8x32xf32>
    %c0_95 = arith.constant 0 : index
    %c0_96 = arith.constant 0 : index
    %190 = vector.load %arg6[%c0_95, %c0_96] : memref<32x32xbf16, #tpu.memory_space<vmem>>, vector<32x32xbf16>
    %cst_97 = arith.constant dense<0.000000e+00> : vector<8x32xf32>
    %191 = tpu.matmul %177, %190, %cst_97 {dimension_numbers = #tpu.dot_dimension_numbers<[1], [0], [0], [1], [0, 0, 1, 1], [], []>} : vector<8x32xbf16>, vector<32x32xbf16>, vector<8x32xf32> -> vector<8x32xf32>
    %192 = arith.addf %189, %191 : vector<8x32xf32>
    %cst_98 = arith.constant 0.000000e+00 : f32
    %193 = vector.broadcast %cst_98 : f32 to vector<8x32xf32>
    %194 = arith.subf %168, %193 : vector<8x32xf32>
    %cst_99 = arith.constant 0.818730771 : f32
    %195 = vector.broadcast %cst_99 : f32 to vector<8x32xf32>
    %196 = arith.mulf %194, %195 : vector<8x32xf32>
    %cst_100 = arith.constant 0.000000e+00 : f32
    %197 = vector.broadcast %cst_100 : f32 to vector<8x32xf32>
    %198 = arith.addf %196, %197 : vector<8x32xf32>
    %199 = arith.addf %198, %192 : vector<8x32xf32>
    %cst_101 = arith.constant 0.000000e+00 : f32
    %200 = vector.broadcast %cst_101 : f32 to vector<8x32xf32>
    %201 = arith.cmpf ogt, %174, %200 : vector<8x32xf32>
    %cst_102 = arith.constant 0.000000e+00 : f32
    %202 = vector.broadcast %cst_102 : f32 to vector<8x32xf32>
    %203 = arith.select %201, %202, %199 : vector<8x32xi1>, vector<8x32xf32>
    %cst_103 = arith.constant 5.000000e-01 : f32
    %204 = vector.broadcast %cst_103 : f32 to vector<8x32xf32>
    %205 = arith.cmpf oge, %203, %204 : vector<8x32xf32>
    %cst_104 = arith.constant 1.000000e+00 : f32
    %206 = vector.broadcast %cst_104 : f32 to vector<8x32xf32>
    %207 = arith.subf %174, %206 : vector<8x32xf32>
    %cst_105 = arith.constant 1.000000e+00 : f32
    %208 = vector.broadcast %cst_105 : f32 to vector<8x32xf32>
    %209 = arith.select %205, %208, %207 : vector<8x32xi1>, vector<8x32xf32>
    %210 = arith.extui %205 : vector<8x32xi1> to vector<8x32xi32>
    %211 = arith.sitofp %210 : vector<8x32xi32> to vector<8x32xf32>
    %212 = arith.truncf %211 : vector<8x32xf32> to vector<8x32xbf16>
    %213 = vector.extract_strided_slice %205 {offsets = [0, 24], sizes = [8, 8], strides = [1, 1]} : vector<8x32xi1> to vector<8x8xi1>
    %214 = arith.extui %213 : vector<8x8xi1> to vector<8x8xi32>
    %215 = arith.sitofp %214 : vector<8x8xi32> to vector<8x8xf32>
    %216 = arith.truncf %215 : vector<8x8xf32> to vector<8x8xbf16>
    %c0_106 = arith.constant 0 : index
    %217 = arith.index_cast %c5_i32 : i32 to index
    %c0_107 = arith.constant 0 : index
    %c0_108 = arith.constant 0 : index
    %218 = vector.load %arg4[%c0_106, %217, %c0_107, %c0_108] : memref<1x8x8x8xbf16, #tpu.memory_space<vmem>>, vector<1x1x8x8xbf16>
    %219 = vector.shape_cast %218 : vector<1x1x8x8xbf16> to vector<8x8xbf16>
    %220 = vector.shape_cast %216 : vector<8x8xbf16> to vector<1x1x8x8xbf16>
    tpu.vector_store %arg4[%c0_106, %217, %c0_107, %c0_108], %220 {strides = array<i32>} : memref<1x8x8x8xbf16, #tpu.memory_space<vmem>>, vector<1x1x8x8xbf16>,
    %c6_i32 = arith.constant 6 : i32
    %c8_i32_109 = arith.constant 8 : i32
    %221 = arith.muli %c6_i32, %c8_i32_109 : i32
    %222 = tpu.assume_multiple %221, 8 : i32
    %223 = arith.index_cast %222 : i32 to index
    %c0_110 = arith.constant 0 : index
    %224 = vector.load %arg10[%223, %c0_110] : memref<64x32xf32, #tpu.memory_space<vmem>>, vector<8x32xf32>
    %c0_111 = arith.constant 0 : index
    %c0_112 = arith.constant 0 : index
    %225 = vector.load %arg6[%c0_111, %c0_112] : memref<32x32xbf16, #tpu.memory_space<vmem>>, vector<32x32xbf16>
    %cst_113 = arith.constant dense<0.000000e+00> : vector<8x32xf32>
    %226 = tpu.matmul %212, %225, %cst_113 {dimension_numbers = #tpu.dot_dimension_numbers<[1], [0], [0], [1], [0, 0, 1, 1], [], []>} : vector<8x32xbf16>, vector<32x32xbf16>, vector<8x32xf32> -> vector<8x32xf32>
    %227 = arith.addf %224, %226 : vector<8x32xf32>
    %cst_114 = arith.constant 0.000000e+00 : f32
    %228 = vector.broadcast %cst_114 : f32 to vector<8x32xf32>
    %229 = arith.subf %203, %228 : vector<8x32xf32>
    %cst_115 = arith.constant 0.818730771 : f32
    %230 = vector.broadcast %cst_115 : f32 to vector<8x32xf32>
    %231 = arith.mulf %229, %230 : vector<8x32xf32>
    %cst_116 = arith.constant 0.000000e+00 : f32
    %232 = vector.broadcast %cst_116 : f32 to vector<8x32xf32>
    %233 = arith.addf %231, %232 : vector<8x32xf32>
    %234 = arith.addf %233, %227 : vector<8x32xf32>
    %cst_117 = arith.constant 0.000000e+00 : f32
    %235 = vector.broadcast %cst_117 : f32 to vector<8x32xf32>
    %236 = arith.cmpf ogt, %209, %235 : vector<8x32xf32>
    %cst_118 = arith.constant 0.000000e+00 : f32
    %237 = vector.broadcast %cst_118 : f32 to vector<8x32xf32>
    %238 = arith.select %236, %237, %234 : vector<8x32xi1>, vector<8x32xf32>
    %cst_119 = arith.constant 5.000000e-01 : f32
    %239 = vector.broadcast %cst_119 : f32 to vector<8x32xf32>
    %240 = arith.cmpf oge, %238, %239 : vector<8x32xf32>
    %cst_120 = arith.constant 1.000000e+00 : f32
    %241 = vector.broadcast %cst_120 : f32 to vector<8x32xf32>
    %242 = arith.subf %209, %241 : vector<8x32xf32>
    %cst_121 = arith.constant 1.000000e+00 : f32
    %243 = vector.broadcast %cst_121 : f32 to vector<8x32xf32>
    %244 = arith.select %240, %243, %242 : vector<8x32xi1>, vector<8x32xf32>
    %245 = arith.extui %240 : vector<8x32xi1> to vector<8x32xi32>
    %246 = arith.sitofp %245 : vector<8x32xi32> to vector<8x32xf32>
    %247 = arith.truncf %246 : vector<8x32xf32> to vector<8x32xbf16>
    %248 = vector.extract_strided_slice %240 {offsets = [0, 24], sizes = [8, 8], strides = [1, 1]} : vector<8x32xi1> to vector<8x8xi1>
    %249 = arith.extui %248 : vector<8x8xi1> to vector<8x8xi32>
    %250 = arith.sitofp %249 : vector<8x8xi32> to vector<8x8xf32>
    %251 = arith.truncf %250 : vector<8x8xf32> to vector<8x8xbf16>
    %c0_122 = arith.constant 0 : index
    %252 = arith.index_cast %c6_i32 : i32 to index
    %c0_123 = arith.constant 0 : index
    %c0_124 = arith.constant 0 : index
    %253 = vector.load %arg4[%c0_122, %252, %c0_123, %c0_124] : memref<1x8x8x8xbf16, #tpu.memory_space<vmem>>, vector<1x1x8x8xbf16>
    %254 = vector.shape_cast %253 : vector<1x1x8x8xbf16> to vector<8x8xbf16>
    %255 = vector.shape_cast %251 : vector<8x8xbf16> to vector<1x1x8x8xbf16>
    tpu.vector_store %arg4[%c0_122, %252, %c0_123, %c0_124], %255 {strides = array<i32>} : memref<1x8x8x8xbf16, #tpu.memory_space<vmem>>, vector<1x1x8x8xbf16>,
    %c7_i32 = arith.constant 7 : i32
    %c8_i32_125 = arith.constant 8 : i32
    %256 = arith.muli %c7_i32, %c8_i32_125 : i32
    %257 = tpu.assume_multiple %256, 8 : i32
    %258 = arith.index_cast %257 : i32 to index
    %c0_126 = arith.constant 0 : index
    %259 = vector.load %arg10[%258, %c0_126] : memref<64x32xf32, #tpu.memory_space<vmem>>, vector<8x32xf32>
    %c0_127 = arith.constant 0 : index
    %c0_128 = arith.constant 0 : index
    %260 = vector.load %arg6[%c0_127, %c0_128] : memref<32x32xbf16, #tpu.memory_space<vmem>>, vector<32x32xbf16>
    %cst_129 = arith.constant dense<0.000000e+00> : vector<8x32xf32>
    %261 = tpu.matmul %247, %260, %cst_129 {dimension_numbers = #tpu.dot_dimension_numbers<[1], [0], [0], [1], [0, 0, 1, 1], [], []>} : vector<8x32xbf16>, vector<32x32xbf16>, vector<8x32xf32> -> vector<8x32xf32>
    %262 = arith.addf %259, %261 : vector<8x32xf32>
    %cst_130 = arith.constant 0.000000e+00 : f32
    %263 = vector.broadcast %cst_130 : f32 to vector<8x32xf32>
    %264 = arith.subf %238, %263 : vector<8x32xf32>
    %cst_131 = arith.constant 0.818730771 : f32
    %265 = vector.broadcast %cst_131 : f32 to vector<8x32xf32>
    %266 = arith.mulf %264, %265 : vector<8x32xf32>
    %cst_132 = arith.constant 0.000000e+00 : f32
    %267 = vector.broadcast %cst_132 : f32 to vector<8x32xf32>
    %268 = arith.addf %266, %267 : vector<8x32xf32>
    %269 = arith.addf %268, %262 : vector<8x32xf32>
    %cst_133 = arith.constant 0.000000e+00 : f32
    %270 = vector.broadcast %cst_133 : f32 to vector<8x32xf32>
    %271 = arith.cmpf ogt, %244, %270 : vector<8x32xf32>
    %cst_134 = arith.constant 0.000000e+00 : f32
    %272 = vector.broadcast %cst_134 : f32 to vector<8x32xf32>
    %273 = arith.select %271, %272, %269 : vector<8x32xi1>, vector<8x32xf32>
    %cst_135 = arith.constant 5.000000e-01 : f32
    %274 = vector.broadcast %cst_135 : f32 to vector<8x32xf32>
    %275 = arith.cmpf oge, %273, %274 : vector<8x32xf32>
    %cst_136 = arith.constant 1.000000e+00 : f32
    %276 = vector.broadcast %cst_136 : f32 to vector<8x32xf32>
    %277 = arith.subf %244, %276 : vector<8x32xf32>
    %cst_137 = arith.constant 1.000000e+00 : f32
    %278 = vector.broadcast %cst_137 : f32 to vector<8x32xf32>
    %279 = arith.select %275, %278, %277 : vector<8x32xi1>, vector<8x32xf32>
    %280 = arith.extui %275 : vector<8x32xi1> to vector<8x32xi32>
    %281 = arith.sitofp %280 : vector<8x32xi32> to vector<8x32xf32>
    %282 = arith.truncf %281 : vector<8x32xf32> to vector<8x32xbf16>
    %283 = vector.extract_strided_slice %275 {offsets = [0, 24], sizes = [8, 8], strides = [1, 1]} : vector<8x32xi1> to vector<8x8xi1>
    %284 = arith.extui %283 : vector<8x8xi1> to vector<8x8xi32>
    %285 = arith.sitofp %284 : vector<8x8xi32> to vector<8x8xf32>
    %286 = arith.truncf %285 : vector<8x8xf32> to vector<8x8xbf16>
    %c0_138 = arith.constant 0 : index
    %287 = arith.index_cast %c7_i32 : i32 to index
    %c0_139 = arith.constant 0 : index
    %c0_140 = arith.constant 0 : index
    %288 = vector.load %arg4[%c0_138, %287, %c0_139, %c0_140] : memref<1x8x8x8xbf16, #tpu.memory_space<vmem>>, vector<1x1x8x8xbf16>
    %289 = vector.shape_cast %288 : vector<1x1x8x8xbf16> to vector<8x8xbf16>
    %290 = vector.shape_cast %286 : vector<8x8xbf16> to vector<1x1x8x8xbf16>
    tpu.vector_store %arg4[%c0_138, %287, %c0_139, %c0_140], %290 {strides = array<i32>} : memref<1x8x8x8xbf16, #tpu.memory_space<vmem>>, vector<1x1x8x8xbf16>,
    %c8_i32_141 = arith.constant 8 : i32
    %c0_142 = arith.constant 0 : index
    %c0_143 = arith.constant 0 : index
    %291 = vector.load %arg7[%c0_142, %c0_143] : memref<8x32xf32, #tpu.memory_space<vmem>>, vector<8x32xf32>
    tpu.vector_store %arg7[%c0_142, %c0_143], %273 {strides = array<i32>} : memref<8x32xf32, #tpu.memory_space<vmem>>, vector<8x32xf32>,
    %c0_144 = arith.constant 0 : index
    %c0_145 = arith.constant 0 : index
    %292 = vector.load %arg8[%c0_144, %c0_145] : memref<8x32xf32, #tpu.memory_space<vmem>>, vector<8x32xf32>
    tpu.vector_store %arg8[%c0_144, %c0_145], %279 {strides = array<i32>} : memref<8x32xf32, #tpu.memory_space<vmem>>, vector<8x32xf32>,
    %c0_146 = arith.constant 0 : index
    %c0_147 = arith.constant 0 : index
    %293 = vector.load %arg9[%c0_146, %c0_147] : memref<8x32xbf16, #tpu.memory_space<vmem>>, vector<8x32xbf16>
    tpu.vector_store %arg9[%c0_146, %c0_147], %282 {strides = array<i32>} : memref<8x32xbf16, #tpu.memory_space<vmem>>, vector<8x32xbf16>,
    return
  }
  func.func @transform_0(%arg0: i32) -> (i32, i32, i32) {
    %c0_i32 = arith.constant 0 : i32
    %c0_i32_0 = arith.constant 0 : i32
    %c0_i32_1 = arith.constant 0 : i32
    return %arg0, %c0_i32, %c0_i32_0 : i32, i32, i32
  }
  func.func @transform_3(%arg0: i32) -> (i32, i32, i32, i32) {
    %c0_i32 = arith.constant 0 : i32
    %c0_i32_0 = arith.constant 0 : i32
    %c0_i32_1 = arith.constant 0 : i32
    %c0_i32_2 = arith.constant 0 : i32
    return %arg0, %c0_i32, %c0_i32_0, %c0_i32_1 : i32, i32, i32, i32
  }
}

</mosaic_0001>

<bundles_post_ra>
// kernel: tpu_custom_call.1
= control target key start
LH: loop header
LB: loop body
LE: loop exit
PB: predicated region body
PF: predicated region fallthrough
CT: control target
= control target key end

     0   :  { %8 = vsyncpa [#allocation10], 0  ;;  %s1549_s0 = inlined_call_operand.vmem [shape: bf16[2,64,8], index: 0, kind: input, shape index: {}]   ;;  %s1550_s1 = inlined_call_operand.vmem [shape: bf16[8,32], index: 1, kind: input, shape index: {}]   ;;  %s1551_s2 = inlined_call_operand.vmem [shape: bf16[32,32], index: 2, kind: input, shape index: {}]   ;;  %s1552_s3 = inlined_call_operand.hbm [shape: bf16[2,8,8,8], index: 3, kind: output, shape index: {}]  }
   0x1   :  { %10 = vsyncpa [#allocation10 + $0x1], 0  ;;  %s1315_s12 = smov 0   ;;  %s1317_s13 = smov 0  }
   0x2   :  { %s1319_s14 = smov 0   ;;  %s1321_s15 = smov 0  }
   0x3 LB: > { %s1336_s16 = sadd.s32 4294967295, %s1285_s15   ;;  %s993_s17 = sadd.s32 4294967294, %s1285_s15   ;;  %s1285_s15 = sphi %s1321_s15, %s1558_s15   ;;  %s1281_s14 = sphi %s1319_s14, %s1557_s14   ;;  %s1277_s13 = sphi %s1317_s13, %s1556_s13   ;;  %s1273_s12 = sphi %s1315_s12, %s1555_s12  }
   0x4   : > { %s1340_s18 = sadd.s32 1, %s1285_s15   ;;  %s49_s19 = sadd.s32 1, %s1281_s14 }
   0x5   : > { %s46_s20 = ssub.s32 %s1285_s15, %s1340_s18  ;;  %p59_p0 = scmp.ne.s32.totalorder %s1281_s14, %s1277_s13 }
   0x6   : > { %p47_p1 = scmp.eq.s32.totalorder %s46_s20, 0  ;;  %p60_p2 = scmp.eq.s32.totalorder %s1336_s16, 1 }
   0x7   : > { %p65_p3 = scmp.ne.s32.totalorder %s1277_s13, %s1273_s12  ;;  %p66_p4 = scmp.eq.s32.totalorder %s993_s17, 1 }
   0x8   : > { %s1351_s21 = scalar_select %p47_p1, %s1281_s14, %s49_s19  }
   0x9   : > { %p1353_p5 = por %p60_p2, %p59_p0  ;;  %p1357_p6 = por %p66_p4, %p65_p3 }
   0xa   : > { %p996_p7 = scmp.ge.s32.totalorder %s1285_s15, 1  ;;  %p92_p8 = scmp.lt.s32.totalorder %s1285_s15, 3 }
   0xc   : > { %p93_p9 = pnand %p996_p7, %p92_p8 }
   0xd   : > { %s109_s24 = sand.u32 (!%p93_p9), 1, %s1277_s13   ;;  %p112_p10 = scmp.lt.s32.totalorder (!%p93_p9), %s1336_s16, 1 }
   0xe   : > { %96 = sbr.rel (%p93_p9) target bundleno = 1951 (0x79f), region = 24  ;;  %s997_s25 = sshll.u32 (!%p93_p9), %s109_s24, 5 }
   0xf   : > { %s1373_s4 = scalar_lea.vmem (!%p93_p9), [#allocation9], %s997_s25  ;;  %p1000_p11 = scmp.ne.s32.totalorder (!%p93_p9), %s1336_s16, 0 }
  0x15   : > { %s113_s26 = scalar_select %p112_p10, %s1336_s16, 1 }
  0x16   : > { %121 = sbr.rel (%p1000_p11) target bundleno = 38 (0x26), region = 28  ;;  %v139_v0 = vld [vmem:[%s1550_s1] sm:$0xf] (!%p1000_p11) }
  0x17   : > { %s1055_s27 = sshll.u32 %s113_s26, 5  ;;  %140 = vst [vmem:[#allocation2] sm:$0xf] (!%p1000_p11), %v139_v0 }
  0x18   : > { %s1371_s30 = scalar_lea.vmem %s1549_s0, %s1055_s27 }
  0x1d   : > { %165 = vsyncadd [#allocation8], 64  ;;  %v199_v1 = vld [vmem:[%s1551_s2] sm:$0xff]  ;;  %v201_v2 = vld [vmem:[%s1551_s2 + $0x8] sm:$0xff] }
  0x1e   : > { %200 = vst [vmem:[#allocation3] sm:$0xff] %v199_v1  ;;  %202 = vst [vmem:[#allocation3 + $0x8] sm:$0xff] %v201_v2 }
  0x1f   : > { %210 = vsyncadd [#allocation8 + $0x1], 256  ;;  %vm211_vm0 = vcmask 261120   ;;  %vm214_vm1 = vcmask 257024   ;;  %v1287_v3 = vmov 0.0   ;;  %v1288_v4 = vmov 0  }
  0x20   : > { %212 = vst.msk [vmem:[#allocation4] sm:$0xff] %vm211_vm0, %v1287_v3  ;;  %213 = vst.msk [vmem:[#allocation5] sm:$0xff] %vm211_vm0, %v1287_v3 }
  0x21   : > { %215 = vst.msk [vmem:[#allocation6] sm:$0xf] %vm214_vm1, %v1288_v4 }
  0x22   : > { %1263 = dma.done.wait [#allocation8], 64 }
  0x23   : > { %1264 = vsyncadd [#allocation8], 4294967232 }
  0x24   : > { %1265 = dma.done.wait [#allocation8 + $0x1], 256 }
  0x25   : > { %1266 = vsyncadd [#allocation8 + $0x1], 4294967040 }
  0x26 PF: > { %vm266_vm2 = vcmask 1043456   ;;  %v1289_v7 = vmov 0.0   ;;  %v1215_v8 = vld [vmem:[%s1371_s30] sm:$0xff]   ;;  %vm253_vm3 = vcmask 64512   ;;  %v1387_v9 = vld [vmem:[#allocation3] sm:$0xff]  ;;  %v1216_v10 = vld [vmem:[%s1371_s30 + $0x8] sm:$0xff]  }
  0x27   : > { %v232_v5 = vld [vmem:[#allocation2] sm:$0xf]  ;;  %1104 = vmatprep.subr.bf16.mxu1 %v1289_v7  ;;  %1096 = vmatprep.mubr.msk.bf16.mxu0 %vm253_vm3, %v1215_v8  ;;  %v1393_v11 = vld [vmem:[#allocation3 + $0x8] sm:$0xff]  ;;  %vm1290_vm4 = vmmov 0   ;;  %vm335_vm5 = vcmask 261120   ;;  %v344_v18 = vld [vmem:[#allocation4] sm:$0xff] }
  0x28   : > { %1168 = vmatprep.subr.msk.bf16.mxu0 %vm266_vm2, %v232_v5  ;;  %v268_v6 = vsel %vm266_vm2, %v232_v5, 0  ;;  %1105 = vmatpush3.bf16.msra.mxu1 %v1387_v9  ;;  %v346_v12 = vld [vmem:[#allocation6] sm:$0xf]  ;;  %v1218_v22 = vld [vmem:[%s1371_s30 + $0x18] sm:$0xff]   ;;  %v394_v24 = vmul.f32 0.8187308, %v344_v18 }
  0x29   : > { %1095 = vmatpush3.bf16.msra.mxu0 %v268_v6  ;;  %1106 = vmatprep.subr.bf16.mxu1 %v1289_v7  ;;  %v1217_v21 = vld [vmem:[%s1371_s30 + $0x10] sm:$0xff]   ;;  %s1291_s11 = smov 104   ;;  %vm411_vm8 = vcmask 60416   ;;  %s1064_s17 = sshll.u32 %s1336_s16, 9 }
  0x2a   : > { %1108 = vmatprep.mubr.msk.bf16.mxu1 %vm1290_vm4, %v1289_v7  ;;  %1120 = vmatprep.subr.bf16.mxu0 %v1289_v7  ;;  %v345_v25 = vld [vmem:[#allocation5] sm:$0xff]  ;;  %s900_s19 = sshll.u32 %s1373_s4, 4  ;;  %s1500_s26 = scalar_lea.hbm %s1552_s3, %s1064_s17  ;;  %s1502_s19 = int_to_ptr.vmem [resolvable:$true] %s900_s19 }
  0x2b   : > { %vm397_vm6 = vcmp.gt.f32.partialorder %v345_v25, 0.0  ;;  %v1010_v33 = vadd.f32 -1.0, %v345_v25  ;;  %s1508_s27 = scalar_lea.sflag [#allocation10], %s109_s24  ;;  %s1219_s28 = scalar_lea.vmem %s1502_s19, 512 }
  0x2c   : > { %1097 = vmatmul.mubr.msk.bf16.vlgmr.msra.gmra.mrb[0].mxu0 %vm253_vm3, %v1216_v10  ;;  %1107 = vmatpush3.bf16.msra.mxu1 %v1393_v11  ;;  %p1220_p12 = scmp.ne.s32.totalorder %s1502_s19, %s1219_s28  ;;  %s1292_s16 = smov [#allocation9]  }
  0x2d   : > { %1121 = vmatpush3.bf16.msra.mxu0 %v1387_v9  ;;  %1112 = vmatprep.subr.bf16.mxu1 %v1289_v7  ;;  %s1223_s29 = sshll.u32 %s1292_s16, 4  ;;  %s1224_s29 = int_to_ptr.vmem [resolvable:$false] %s1223_s29 }
  0x2e   : > { %1122 = vmatprep.subr.bf16.mxu0 %v1289_v7  ;;  %1100 = vmatprep.mubr.msk.bf16.mxu0 %vm253_vm3, %v1217_v21  ;;  %p1221_p13 = pnand %p1220_p12, %p1353_p5  ;;  %s1225_s30 = scalar_lea.vmem %s1224_s29, 1024 }
  0x2f   : > { %1109 = vmatmul.mubr.msk.bf16.vlgmr.msra.gmra.mrb[0].mxu1 %vm335_vm5, %v346_v12  ;;  %p1226_p1 = scmp.lt.s32.totalorder %s1502_s19, %s1224_s29  ;;  %p1227_p2 = scmp.lt.s32.totalorder %s1225_s30, %s1219_s28 }
  0x30   : > { %1113 = vmatpush3.bf16.msra.mxu1 %v1387_v9  ;;  %1116 = vmatprep.mubr.msk.bf16.mxu1 %vm1290_vm4, %v1289_v7  ;;  %p1222_p0 = pneg %p1221_p13 }
  0x31   : > { %1114 = vmatprep.subr.bf16.mxu1 %v1289_v7  ;;  %1123 = vmatpush3.bf16.msra.mxu0 %v1393_v11  ;;  %p1228_p3 = por %p1227_p2, %p1226_p1 }
  0x32   : > { %1136 = vmatprep.subr.bf16.mxu0 %v1289_v7 }
  0x33   : > { %p1229_p4 = pnand %p1228_p3, %p1222_p0 }
  0x34   : > { %1115 = vmatpush3.bf16.msra.mxu1 %v1393_v11  ;;  %1101 = vmatmul.mubr.msk.bf16.gmra.mrb[4].mxu0 %vm253_vm3, %v1218_v22 }
  0x35   : > { %1128 = vmatprep.subr.bf16.mxu1 %v1289_v7  ;;  %1124 = vmatprep.mubr.msk.bf16.mxu0 %vm1290_vm4, %v1289_v7 }
  0xff   : > { %v1098_v13 = vpop.f32.mrb[0].mxu0 }
 0x100   : > { %338 = vst.msk [vmem:[#allocation7 + $0x10] sm:$0xff] %vm335_vm5, %v1098_v13  ;;  %v304_v14 = vpop.f32.mrb[1].mxu0 }
 0x101   : > { %336 = vst.msk [vmem:[#allocation7] sm:$0xff] %vm335_vm5, %v304_v14  ;;  %v1099_v15 = vpop.f32.mrb[2].mxu0 }
 0x102   : > { %339 = vst.msk [vmem:[#allocation7 + $0x18] sm:$0xff] %vm335_vm5, %v1099_v15  ;;  %v307_v16 = vpop.f32.mrb[3].mxu0  ;;  %v387_v17 = vpop.f32.mrb[0].mxu1 }
 0x103   : > { %337 = vst.msk [vmem:[#allocation7 + $0x8] sm:$0xff] %vm335_vm5, %v307_v16  ;;  %v1110_v19 = vpop.f32.mrb[1].mxu1 }
 0x104   : > { %v390_v20 = vpop.f32.mrb[2].mxu1 }
 0x105   : > { %v1111_v23 = vpop.f32.mrb[3].mxu1 }
 0x107   : > { %v1102_v34 = vpop.f32.mrb[4].mxu0  ;;  %v481_v53 = vld [vmem:[#allocation7 + $0x10] sm:$0xff] }
 0x108   : > { %v347_v26 = vld [vmem:[#allocation7] sm:$0xff]  ;;  %342 = vst.msk [vmem:[#allocation7 + $0x30] sm:$0xff] %vm335_vm5, %v1102_v34  ;;  %v320_v35 = vpop.f32.mrb[5].mxu0 }
 0x109   : > { %v393_v27 = vadd.f32 %v387_v17, %v347_v26  ;;  %340 = vst.msk [vmem:[#allocation7 + $0x20] sm:$0xff] %vm335_vm5, %v320_v35  ;;  %v1103_v36 = vpop.f32.mrb[6].mxu0  ;;  %v548_v3 = vld [vmem:[#allocation7 + $0x18] sm:$0xff] }
 0x10a   : > { %v414_v37 = vld [vmem:[#allocation7 + $0x8] sm:$0xff]  ;;  %343 = vst.msk [vmem:[#allocation7 + $0x38] sm:$0xff] %vm335_vm5, %v1103_v36  ;;  %v323_v39 = vpop.f32.mrb[7].mxu0 }
 0x10b   : > { %v396_v28 = vadd.f32 %v394_v24, %v393_v27  ;;  %341 = vst.msk [vmem:[#allocation7 + $0x28] sm:$0xff] %vm335_vm5, %v323_v39 }
 0x10d   : > { %v398_v29 = vsel %vm397_vm6, 0.0, %v396_v28 }
 0x10e   : > { %vm399_vm7 = vcmp.ge.f32.partialorder %v398_v29, 0.5  ;;  %v461_v42 = vmul.f32 0.8187308, %v398_v29 }
 0x10f   : > { %v1011_v30 = vsel %vm399_vm7, 1.0, %v1289_v7  ;;  %v401_v40 = vsel %vm399_vm7, 1.0, %v1010_v33 }
 0x110   : > { %v404_v31 = vpack.c.bf16 %v1011_v30, %v1011_v30  ;;  %vm464_vm9 = vcmp.gt.f32.partialorder %v401_v40, 0.0  ;;  %v1014_v47 = vadd.f32 -1.0, %v401_v40  ;;  %v615_v20 = vld [vmem:[#allocation7 + $0x20] sm:$0xff] }
 0x112   : > { %408 = vrot.lane.b32.xlu0 %v404_v31, %s1291_s11  ;;  %1117 = vmatmul.mubr.msk.bf16.vlgmr.msra.gmra.mrb[4].mxu1 %vm335_vm5, %v404_v31  ;;  %v682_v34 = vld [vmem:[#allocation7 + $0x28] sm:$0xff] }
 0x113   : > { %1129 = vmatpush3.bf16.msra.mxu1 %v1387_v9  ;;  %1132 = vmatprep.mubr.msk.bf16.mxu1 %vm1290_vm4, %v1289_v7 }
 0x114   : > { %1130 = vmatprep.subr.bf16.mxu1 %v1289_v7 }
 0x117   : > { %1131 = vmatpush3.bf16.msra.mxu1 %v1393_v11 }
 0x118   : > { %1144 = vmatprep.subr.bf16.mxu1 %v1289_v7 }
 0x184   : > { %v409_v32 = vpop.permute.xlu0 %408 }
 0x185   : > { %412 = vst.msk [vmem:[%s1373_s4] sm:$0xf] %vm411_vm8, %v409_v32 }
 0x1e5   : > { %v454_v38 = vpop.f32.mrb[4].mxu1 }
 0x1e6   : > { %v460_v41 = vadd.f32 %v454_v38, %v414_v37  ;;  %v1118_v43 = vpop.f32.mrb[5].mxu1 }
 0x1e7   : > { %v457_v44 = vpop.f32.mrb[6].mxu1 }
 0x1e8   : > { %v463_v45 = vadd.f32 %v461_v42, %v460_v41  ;;  %v1119_v46 = vpop.f32.mrb[7].mxu1 }
 0x1e9   : > { %v749_v46 = vld [vmem:[#allocation7 + $0x30] sm:$0xff] }
 0x1ea   : > { %v465_v48 = vsel %vm464_vm9, 0.0, %v463_v45  ;;  %vm884_vm9 = vcmask 257024  }
 0x1eb   : > { %vm466_vm10 = vcmp.ge.f32.partialorder %v465_v48, 0.5  ;;  %v528_v56 = vmul.f32 0.8187308, %v465_v48 }
 0x1ec   : > { %v1015_v49 = vsel %vm466_vm10, 1.0, %v1289_v7  ;;  %v468_v50 = vsel %vm466_vm10, 1.0, %v1014_v47 }
 0x1ed   : > { %v471_v51 = vpack.c.bf16 %v1015_v49, %v1015_v49  ;;  %vm531_vm11 = vcmp.gt.f32.partialorder %v468_v50, 0.0  ;;  %v1019_v62 = vadd.f32 -1.0, %v468_v50 }
 0x1ef   : > { %475 = vrot.lane.b32.xlu0 %v471_v51, %s1291_s11  ;;  %1125 = vmatmul.mubr.msk.bf16.vlgmr.msra.gmra.mrb[8].mxu0 %vm335_vm5, %v471_v51 }
 0x1f0   : > { %1137 = vmatpush3.bf16.msra.mxu0 %v1387_v9  ;;  %1140 = vmatprep.mubr.msk.bf16.mxu0 %vm1290_vm4, %v1289_v7 }
 0x1f1   : > { %1138 = vmatprep.subr.bf16.mxu0 %v1289_v7 }
 0x1f4   : > { %1139 = vmatpush3.bf16.msra.mxu0 %v1393_v11 }
 0x1f5   : > { %1152 = vmatprep.subr.bf16.mxu0 %v1289_v7 }
 0x261   : > { %v476_v52 = vpop.permute.xlu0 %475 }
 0x262   : > { %1017 = vst.msk [vmem:[%s1373_s4 + $0x4] sm:$0xf] %vm411_vm8, %v476_v52 }
 0x2c2   : > { %v521_v54 = vpop.f32.mrb[8].mxu0 }
 0x2c3   : > { %v527_v55 = vadd.f32 %v521_v54, %v481_v53  ;;  %v1126_v57 = vpop.f32.mrb[9].mxu0 }
 0x2c4   : > { %v524_v58 = vpop.f32.mrb[10].mxu0 }
 0x2c5   : > { %v530_v59 = vadd.f32 %v528_v56, %v527_v55  ;;  %v1127_v60 = vpop.f32.mrb[11].mxu0 }
 0x2c6   : > { %v816_v60 = vld [vmem:[#allocation7 + $0x38] sm:$0xff] }
 0x2c7   : > { %v532_v61 = vsel %vm531_vm11, 0.0, %v530_v59 }
 0x2c8   : > { %vm533_vm12 = vcmp.ge.f32.partialorder %v532_v61, 0.5  ;;  %v595_v6 = vmul.f32 0.8187308, %v532_v61 }
 0x2c9   : > { %v1020_v63 = vsel %vm533_vm12, 1.0, %v1289_v7  ;;  %v535_v0 = vsel %vm533_vm12, 1.0, %v1019_v62 }
 0x2ca   : > { %v538_v1 = vpack.c.bf16 %v1020_v63, %v1020_v63  ;;  %vm598_vm13 = vcmp.gt.f32.partialorder %v535_v0, 0.0  ;;  %v1024_v14 = vadd.f32 -1.0, %v535_v0 }
 0x2cc   : > { %542 = vrot.lane.b32.xlu1 %v538_v1, %s1291_s11  ;;  %1133 = vmatmul.mubr.msk.bf16.vlgmr.msra.gmra.mrb[8].mxu1 %vm335_vm5, %v538_v1 }
 0x2cd   : > { %1145 = vmatpush3.bf16.msra.mxu1 %v1387_v9  ;;  %1148 = vmatprep.mubr.msk.bf16.mxu1 %vm1290_vm4, %v1289_v7 }
 0x2ce   : > { %1146 = vmatprep.subr.bf16.mxu1 %v1289_v7 }
 0x2d1   : > { %1147 = vmatpush3.bf16.msra.mxu1 %v1393_v11 }
 0x2d2   : > { %1160 = vmatprep.subr.bf16.mxu1 %v1289_v7 }
 0x33e   : > { %v543_v2 = vpop.permute.xlu1 %542 }
 0x33f   : > { %1022 = vst.msk [vmem:[%s1373_s4 + $0x8] sm:$0xf] %vm411_vm8, %v543_v2 }
 0x39f   : > { %v588_v4 = vpop.f32.mrb[8].mxu1 }
 0x3a0   : > { %v594_v5 = vadd.f32 %v588_v4, %v548_v3  ;;  %v1134_v8 = vpop.f32.mrb[9].mxu1 }
 0x3a1   : > { %v591_v10 = vpop.f32.mrb[10].mxu1 }
 0x3a2   : > { %v597_v12 = vadd.f32 %v595_v6, %v594_v5  ;;  %v1135_v13 = vpop.f32.mrb[11].mxu1 }
 0x3a4   : > { %v599_v15 = vsel %vm598_vm13, 0.0, %v597_v12 }
 0x3a5   : > { %vm600_vm14 = vcmp.ge.f32.partialorder %v599_v15, 0.5  ;;  %v662_v23 = vmul.f32 0.8187308, %v599_v15 }
 0x3a6   : > { %v1025_v16 = vsel %vm600_vm14, 1.0, %v1289_v7  ;;  %v602_v17 = vsel %vm600_vm14, 1.0, %v1024_v14 }
 0x3a7   : > { %v605_v18 = vpack.c.bf16 %v1025_v16, %v1025_v16  ;;  %vm665_vm15 = vcmp.gt.f32.partialorder %v602_v17, 0.0  ;;  %v1029_v28 = vadd.f32 -1.0, %v602_v17 }
 0x3a9   : > { %609 = vrot.lane.b32.xlu1 %v605_v18, %s1291_s11  ;;  %1141 = vmatmul.mubr.msk.bf16.vlgmr.msra.gmra.mrb[12].mxu0 %vm335_vm5, %v605_v18 }
 0x3aa   : > { %1153 = vmatpush3.bf16.msra.mxu0 %v1387_v9  ;;  %1156 = vmatprep.mubr.msk.bf16.mxu0 %vm1290_vm4, %v1289_v7 }
 0x3ab   : > { %1154 = vmatprep.subr.bf16.mxu0 %v1289_v7 }
 0x3ae   : > { %1155 = vmatpush3.bf16.msra.mxu0 %v1393_v11 }
 0x41b   : > { %v610_v19 = vpop.permute.xlu1 %609 }
 0x41c   : > { %1027 = vst.msk [vmem:[%s1373_s4 + $0xc] sm:$0xf] %vm411_vm8, %v610_v19 }
 0x47c   : > { %v655_v21 = vpop.f32.mrb[12].mxu0 }
 0x47d   : > { %v661_v22 = vadd.f32 %v655_v21, %v615_v20  ;;  %v1142_v24 = vpop.f32.mrb[13].mxu0 }
 0x47e   : > { %v658_v25 = vpop.f32.mrb[14].mxu0 }
 0x47f   : > { %v664_v26 = vadd.f32 %v662_v23, %v661_v22  ;;  %v1143_v27 = vpop.f32.mrb[15].mxu0 }
 0x481   : > { %v666_v29 = vsel %vm665_vm15, 0.0, %v664_v26 }
 0x482   : > { %vm667_vm0 = vcmp.ge.f32.partialorder %v666_v29, 0.5  ;;  %v729_v37 = vmul.f32 0.8187308, %v666_v29 }
 0x483   : > { %v1030_v30 = vsel %vm667_vm0, 1.0, %v1289_v7  ;;  %v669_v31 = vsel %vm667_vm0, 1.0, %v1029_v28 }
 0x484   : > { %v672_v32 = vpack.c.bf16 %v1030_v30, %v1030_v30  ;;  %vm732_vm1 = vcmp.gt.f32.partialorder %v669_v31, 0.0 }
 0x486   : > { %676 = vrot.lane.b32.xlu0 %v672_v32, %s1291_s11  ;;  %1149 = vmatmul.mubr.msk.bf16.vlgmr.msra.gmra.mrb[12].mxu1 %vm335_vm5, %v672_v32 }
 0x487   : > { %1161 = vmatpush3.bf16.msra.mxu1 %v1387_v9  ;;  %1164 = vmatprep.mubr.msk.bf16.mxu1 %vm1290_vm4, %v1289_v7  ;;  %v1034_v9 = vadd.f32 -1.0, %v669_v31 }
 0x488   : > { %1162 = vmatprep.subr.bf16.mxu1 %v1289_v7 }
 0x48b   : > { %1163 = vmatpush3.bf16.msra.mxu1 %v1393_v11 }
 0x4f8   : > { %v677_v33 = vpop.permute.xlu0 %676 }
 0x4f9   : > { %1032 = vst.msk [vmem:[%s1373_s4 + $0x10] sm:$0xf] %vm411_vm8, %v677_v33 }
 0x559   : > { %v722_v35 = vpop.f32.mrb[12].mxu1 }
 0x55a   : > { %v728_v36 = vadd.f32 %v722_v35, %v682_v34  ;;  %v1150_v38 = vpop.f32.mrb[13].mxu1 }
 0x55b   : > { %v725_v39 = vpop.f32.mrb[14].mxu1 }
 0x55c   : > { %v731_v40 = vadd.f32 %v729_v37, %v728_v36  ;;  %v1151_v41 = vpop.f32.mrb[15].mxu1 }
 0x55e   : > { %v733_v42 = vsel %vm732_vm1, 0.0, %v731_v40 }
 0x55f   : > { %vm734_vm2 = vcmp.ge.f32.partialorder %v733_v42, 0.5  ;;  %v796_v49 = vmul.f32 0.8187308, %v733_v42 }
 0x560   : > { %v1035_v43 = vsel %vm734_vm2, 1.0, %v1289_v7  ;;  %v736_v44 = vsel %vm734_vm2, 1.0, %v1034_v9 }
 0x561   : > { %v739_v11 = vpack.c.bf16 %v1035_v43, %v1035_v43  ;;  %vm799_vm3 = vcmp.gt.f32.partialorder %v736_v44, 0.0  ;;  %v1039_v54 = vadd.f32 -1.0, %v736_v44 }
 0x563   : > { %743 = vrot.lane.b32.xlu1 %v739_v11, %s1291_s11  ;;  %1157 = vmatmul.mubr.msk.bf16.vlgmr.msra.gmra.mrb[16].mxu0 %vm335_vm5, %v739_v11 }
 0x5d5   : > { %v744_v45 = vpop.permute.xlu1 %743 }
 0x5d6   : > { %1037 = vst.msk [vmem:[%s1373_s4 + $0x14] sm:$0xf] %vm411_vm8, %v744_v45 }
 0x636   : > { %v789_v47 = vpop.f32.mrb[16].mxu0 }
 0x637   : > { %v795_v48 = vadd.f32 %v789_v47, %v749_v46  ;;  %v1158_v50 = vpop.f32.mrb[17].mxu0 }
 0x638   : > { %v792_v51 = vpop.f32.mrb[18].mxu0 }
 0x639   : > { %v798_v52 = vadd.f32 %v796_v49, %v795_v48  ;;  %v1159_v53 = vpop.f32.mrb[19].mxu0 }
 0x63b   : > { %v800_v55 = vsel %vm799_vm3, 0.0, %v798_v52 }
 0x63c   : > { %vm801_vm4 = vcmp.ge.f32.partialorder %v800_v55, 0.5  ;;  %v863_v63 = vmul.f32 0.8187308, %v800_v55 }
 0x63d   : > { %v1040_v56 = vsel %vm801_vm4, 1.0, %v1289_v7  ;;  %v803_v57 = vsel %vm801_vm4, 1.0, %v1039_v54 }
 0x63e   : > { %v806_v58 = vpack.c.bf16 %v1040_v56, %v1040_v56  ;;  %vm866_vm6 = vcmp.gt.f32.partialorder %v803_v57, 0.0  ;;  %v1044_v4 = vadd.f32 -1.0, %v803_v57 }
 0x640   : > { %810 = vrot.lane.b32.xlu0 %v806_v58, %s1291_s11  ;;  %1165 = vmatmul.mubr.msk.bf16.vlgmr.msra.gmra.mrb[16].mxu1 %vm335_vm5, %v806_v58 }
 0x6b2   : > { %v811_v59 = vpop.permute.xlu0 %810 }
 0x6b3   : > { %1042 = vst.msk [vmem:[%s1373_s4 + $0x18] sm:$0xf] %vm411_vm8, %v811_v59 }
 0x713   : > { %v856_v61 = vpop.f32.mrb[16].mxu1 }
 0x714   : > { %v862_v62 = vadd.f32 %v856_v61, %v816_v60  ;;  %v1166_v0 = vpop.f32.mrb[17].mxu1 }
 0x715   : > { %v859_v1 = vpop.f32.mrb[18].mxu1 }
 0x716   : > { %v865_v2 = vadd.f32 %v863_v63, %v862_v62  ;;  %v1167_v3 = vpop.f32.mrb[19].mxu1 }
 0x718   : > { %v867_v5 = vsel %vm866_vm6, 0.0, %v865_v2 }
 0x719   : > { %882 = vst.msk [vmem:[#allocation4] sm:$0xff] %vm335_vm5, %v867_v5  ;;  %vm868_vm7 = vcmp.ge.f32.partialorder %v867_v5, 0.5 }
 0x71a   : > { %v1045_v6 = vsel %vm868_vm7, 1.0, %v1289_v7  ;;  %v870_v8 = vsel %vm868_vm7, 1.0, %v1044_v4 }
 0x71b   : > { %v873_v10 = vpack.c.bf16 %v1045_v6, %v1045_v6  ;;  %883 = vst.msk [vmem:[#allocation5] sm:$0xff] %vm335_vm5, %v870_v8 }
 0x71d   : > { %877 = vrot.lane.b32.xlu1 %v873_v10, %s1291_s11  ;;  %885 = vst.msk [vmem:[#allocation6] sm:$0xf] %vm884_vm9, %v873_v10 }
 0x78f   : > { %v878_v7 = vpop.permute.xlu1 %877 }
 0x790   : > { %1047 = vst.msk [vmem:[%s1373_s4 + $0x1c] sm:$0xf] %vm411_vm8, %v878_v7 }
 0x791   : > { %1232 = shalt.err (!%p1229_p4)
}
 0x792   : > { %s1233_s24 = scalar_lea.hbm %s1500_s26, 512  ;;  %s1237_s6 = scalar_lea.hbm %s1552_s3, 1024 }
 0x793   : > { %p1234_p7 = scmp.ne.s32.totalorder %s1500_s26, %s1233_s24  ;;  %p1238_p10 = scmp.lt.u32.totalorder %s1500_s26, %s1552_s3 }
 0x794   : > { %p1239_p11 = scmp.lt.u32.totalorder %s1237_s6, %s1233_s24  ;;  %p1241_p13 = scmp.lt.u32.totalorder %s1233_s24, %s1500_s26 }
 0x795   : > { %p1235_p8 = pnand %p1234_p7, %p1353_p5 }
 0x796   : > { %p1240_p12 = por %p1239_p11, %p1238_p10 }
 0x797   : > { %p1236_p9 = pneg %p1235_p8 }
 0x798   : > { %p1242_p0 = por %p1241_p13, %p1240_p12 }
 0x79a   : > { %p1243_p1 = pnand %p1242_p0, %p1236_p9 }
 0x79c   : > { %1246 = shalt.err (!%p1243_p1)
}
 0x79d   : > { %s1293_s9 = smov 64   ;;  %s1294_s10 = smov 4  }
 0x79e   : > { %1169 = dma.vmem_to_hbm [thread:$0]  (%p1353_p5), %s1502_s19, 512, %s1500_s26, %s1508_s27, %s1293_s9, %s1293_s9, %s1294_s10  }
 0x79f PF: > { %p1175_p2 = scmp.ge.s32.totalorder %s1285_s15, 2  ;;  %s915_s11 = sand.u32 1, %s1273_s12  }
 0x7a0   : > { %s916_s17 = scalar_lea.sflag [#allocation10], %s915_s11 }
 0x7a1   : > { %p1172_p3 = pnand %p1175_p2, %p1357_p6 }
 0x7a3   : > { %1268 = dma.done.wait (!%p1172_p3), %s916_s17, 512  }
 0x7a4   : > { %1270 = vsyncadd (!%p1172_p3), %s916_s17, 4294966784  ;;  %p13_p4 = scmp.ge.s32.totalorder %s1340_s18, 4   ;;  %s1555_s12 = smov %s1277_s13 }
 0x7a5   : > { %s1556_s13 = smov %s1281_s14  ;;  %s1557_s14 = smov %s1351_s21 }
 0x7a6   : > { %s1558_s15 = smov %s1340_s18  ;;  %15 = sbr.rel (!%p13_p4) target bundleno = 3 (0x3), region = 161 }
 0x7ad   :  { %921 = vsyncpa [#allocation10], 1 }
 0x7ae   :  { %923 = vsyncpa [#allocation10 + $0x1], 1 }
 0x7af   :  { %924 = vsyncmov [#allocation8] }
 0x7b2   :  { %s925_s15 = vpop.sfrf %924 }
 0x7b3   :  { %p1053_p5 = scmp.ne.s32.totalorder %s925_s15, 0 }
 0x7b5   :  { %929 = shalt.err (%p1053_p5)  }
 0x7b6   :  { %931 = vsyncmov [#allocation8 + $0x1] }
 0x7b9   :  { %s932_s22 = vpop.sfrf %931 }
 0x7ba   :  { %p1054_p6 = scmp.ne.s32.totalorder %s932_s22, 0 }
 0x7bc   :  { %936 = shalt.err (%p1054_p6)  }

</bundles_post_ra>
